<compile_context>
chip_gen: v5e
topology: v5e:2x2
jax: 0.10.0
libtpu: 0.0.40
codegen_flags: <defaults>
</compile_context>

<pallas_src>
import functools

import jax
import jax.numpy as jnp
from jax.experimental import pallas as pl
from jax.experimental.pallas import tpu as pltpu


# ---------------------------------------------------------------------------
# Kernel helpers
# ---------------------------------------------------------------------------

def _log_softmax_f32(logits_ref):
    """Numerically-stable log_softmax along the class (lane) axis, in f32."""
    x = logits_ref[...].astype(jnp.float32)                       # (tm, C)
    m = jnp.max(x, axis=1, keepdims=True)
    shifted = x - m
    lse = jnp.log(jnp.sum(jnp.exp(shifted), axis=1, keepdims=True))
    return shifted - lse


def _tile_partial_sum(logsm, conf_f32, grid_i, total_b, tile_rows):
    """sum over valid rows of sum_c logsm[r, c] * conf[r, c]."""
    row_sum = jnp.sum(logsm * conf_f32, axis=1, keepdims=True)    # (tm, 1)
    # Rows past the true batch size (the last tile may be padded) read
    # undefined HBM-adjacent data; any NaN/Inf they produce is discarded here
    # because jnp.where *selects* -- do not move this mask earlier/later.
    row_id = grid_i * tile_rows + jax.lax.broadcasted_iota(
        jnp.int32, (tile_rows, 1), 0)
    return jnp.sum(jnp.where(row_id < total_b, row_sum, 0.0))


# ---------------------------------------------------------------------------
# Kernels
# ---------------------------------------------------------------------------

def _partial_loss_kernel_onehot(logits_ref, idx_ref, conf_tab_ref, part_ref, *,
                                total_b, tile_rows):
    """Small-N path: gather confidence[index] in-kernel via one-hot matmul.

    logits_ref   : (tile_rows, C)  logits tile
    idx_ref      : (tile_rows, 1)  int32 indices into the confidence table
    conf_tab_ref : (N, C)          full confidence table (single VMEM buffer)
    part_ref     : (8, 128)        per-tile partial sum (lane-dense output)
    """
    i = pl.program_id(0)
    logsm = _log_softmax_f32(logits_ref)

    n_table = conf_tab_ref.shape[0]
    idx = idx_ref[...]                                            # (tm, 1) i32
    table_row = jax.lax.broadcasted_iota(jnp.int32, (tile_rows, n_table), 1)
    # One-hot in the table's own dtype (0/1 are exact in bf16) -> bf16 tables
    # use the native bf16 MXU and the constant table is never re-cast.
    onehot = (table_row == idx).astype(conf_tab_ref.dtype)        # (tm, N)
    conf = jnp.dot(onehot, conf_tab_ref[...],
                   preferred_element_type=jnp.float32)            # (tm, C) f32

    tile_sum = _tile_partial_sum(logsm, conf, i, total_b, tile_rows)
    part_ref[...] = jnp.broadcast_to(tile_sum, (8, 128)).astype(jnp.float32)


def _partial_loss_kernel_gathered(logits_ref, conf_ref, part_ref, *,
                                  total_b, tile_rows):
    """Large-N path: confidence[index] gathered by XLA in the wrapper and
    streamed alongside the logits as a second (tile_rows, C) block."""
    i = pl.program_id(0)
    logsm = _log_softmax_f32(logits_ref)
    conf = conf_ref[...].astype(jnp.float32)
    tile_sum = _tile_partial_sum(logsm, conf, i, total_b, tile_rows)
    part_ref[...] = jnp.broadcast_to(tile_sum, (8, 128)).astype(jnp.float32)


# ---------------------------------------------------------------------------
# Wrapper
# ---------------------------------------------------------------------------

def _round_up(x, m):
    return ((x + m - 1) // m) * m


def _vmem_capacity_bytes():
    """Physical VMEM of this generation (v5e/v6e: 128 MiB, v7x: 64 MiB/TC)."""
    try:
        return int(pltpu.get_tpu_info().vmem_capacity_bytes)
    except Exception:
        return 64 << 20          # conservative fallback (v7x per-TC VMEM)


def _choose_tile_rows(batch, num_classes, n_table, in_itemsize, conf_itemsize,
                      use_onehot, vmem_cap):
    """Largest row tile whose whole working set (double-buffered streamed
    inputs, f32 kernel temporaries, one-hot, lane-padded index block and the
    single-buffered table) fits comfortably inside this generation's VMEM."""
    budget = int(0.45 * vmem_cap)                  # Mosaic-scratch headroom
    fixed = 2 * 8 * 128 * 4                        # output blocks
    per_row = num_classes * (2 * in_itemsize + 6 * 4)   # inputs + f32 temps
    if use_onehot:
        fixed += n_table * num_classes * conf_itemsize  # single-buffered table
        per_row += n_table * conf_itemsize              # (tm, N) one-hot
        per_row += 2 * 128 * 4                          # lane-padded idx block
    else:
        per_row += 2 * num_classes * conf_itemsize      # streamed gathered conf
    rows = (budget - fixed) // max(per_row, 1)
    rows = max(8, (rows // 8) * 8)                 # sublane multiple
    rows = min(rows, 1024)                         # keep per-step DMAs sane
    rows = min(rows, _round_up(batch, 8))          # never larger than batch
    return max(rows, 8)


def partial_loss_forward(outputs, confidence, index, *, tile_rows=None,
                         gather_mode="auto"):
    """Pallas implementation of partial_loss.forward(outputs, index).

    outputs    : (B, C) logits (f32 or bf16)
    confidence : (N, C) confidence table (f32 or bf16)
    index      : (B,)   int indices into the confidence table
    gather_mode: "auto" | "onehot" (in-kernel one-hot gather, small N only)
                 | "wrapper" (XLA gather in the wrapper; works for any N)
    """
    B, C = outputs.shape
    N, C2 = confidence.shape
    assert C == C2, "confidence table class dim must match logits"
    # NOTE: out-of-range indices yield an all-zero confidence row (loss
    # contribution 0) instead of raising, unlike PyTorch advanced indexing.

    vmem_cap = _vmem_capacity_bytes()
    table_bytes = N * C * confidence.dtype.itemsize
    if gather_mode == "auto":
        # The one-hot build costs O(tile_rows * N) VALU ops per tile; keep it
        # only while N is comparable to C and the table is trivially small.
        # Otherwise gather once with XLA (one extra B*C HBM stream).
        use_onehot = (N <= max(2 * C, 128)) and (table_bytes <= (2 << 20))
    elif gather_mode == "onehot":
        use_onehot = True
    elif gather_mode == "wrapper":
        use_onehot = False
    else:
        raise ValueError(f"unknown gather_mode: {gather_mode!r}")

    if tile_rows is None:
        tile_rows = _choose_tile_rows(B, C, N, outputs.dtype.itemsize,
                                      confidence.dtype.itemsize, use_onehot,
                                      vmem_cap)
    tile_rows = max(8, _round_up(int(tile_rows), 8))
    num_tiles = pl.cdiv(B, tile_rows)

    # Honest VMEM accounting (f32 temporaries, single-buffered table, one-hot,
    # lane-padded (tile_rows, 1) index block, double-buffered streamed tiles).
    vmem_need = (2 * tile_rows * C * outputs.dtype.itemsize
                 + 6 * tile_rows * C * 4
                 + 2 * 8 * 128 * 4)
    if use_onehot:
        vmem_need += (table_bytes
                      + tile_rows * N * confidence.dtype.itemsize
                      + 2 * tile_rows * 128 * 4)
    else:
        vmem_need += 2 * tile_rows * C * confidence.dtype.itemsize
    # Cap at ~0.8x physical VMEM: ~102 MiB on v5e/v6e, ~51 MiB on v7x.
    vmem_limit = int(min(max(2 * vmem_need, 32 << 20), int(0.8 * vmem_cap)))

    out_shape = jax.ShapeDtypeStruct((num_tiles * 8, 128), jnp.float32)
    out_spec = pl.BlockSpec((8, 128), lambda i: (i, 0))
    logits_spec = pl.BlockSpec((tile_rows, C), lambda i: (i, 0))
    # TODO(synk): on v7x, switch dimension_semantics to CORE_PARALLEL (or use a
    # core_map with a leading core axis) so both TensorCores split the tiles.
    compiler_params = pltpu.CompilerParams(
        dimension_semantics=("parallel",),
        vmem_limit_bytes=vmem_limit,
    )

    if use_onehot:
        kernel = functools.partial(_partial_loss_kernel_onehot,
                                   total_b=B, tile_rows=tile_rows)
        idx2d = index.astype(jnp.int32).reshape(B, 1)
        partials = pl.pallas_call(
            kernel,
            out_shape=out_shape,
            grid_spec=pltpu.PrefetchScalarGridSpec(
                num_scalar_prefetch=0,
                grid=(num_tiles,),
                in_specs=[
                    logits_spec,                                   # logits
                    pl.BlockSpec((tile_rows, 1), lambda i: (i, 0)),  # index
                    # Constant index_map -> DMA'd once; single-buffer it so
                    # only one (N, C) copy of the table lives in VMEM.
                    pl.BlockSpec((N, C), lambda i: (0, 0),
                                 pipeline_mode=pl.Buffered(1)),
                ],
                out_specs=out_spec,
            ),
            compiler_params=compiler_params,
        )(outputs, idx2d, confidence)
    else:
        kernel = functools.partial(_partial_loss_kernel_gathered,
                                   total_b=B, tile_rows=tile_rows)
        conf_gathered = jnp.take(confidence, index.astype(jnp.int32), axis=0)
        partials = pl.pallas_call(
            kernel,
            out_shape=out_shape,
            grid_spec=pltpu.PrefetchScalarGridSpec(
                num_scalar_prefetch=0,
                grid=(num_tiles,),
                in_specs=[logits_spec,
                          pl.BlockSpec((tile_rows, C), lambda i: (i, 0))],
                out_specs=out_spec,
            ),
            compiler_params=compiler_params,
        )(outputs, conf_gathered)

    # Final reduction in plain JAX: one scalar per tile at [0, 0] of each
    # lane-dense (8, 128) output block.
    tile_scalars = partials.reshape(num_tiles, 8, 128)[:, 0, 0]
    return -jnp.sum(tile_scalars) / jnp.float32(B)


def partial_loss_reference(outputs, confidence, index):
    """Pure-JAX reference matching the PyTorch forward."""
    logsm = jax.nn.log_softmax(outputs.astype(jnp.float32), axis=1)
    final = logsm * confidence[index, :].astype(jnp.float32)
    return -jnp.mean(jnp.sum(final, axis=1))


if __name__ == "__main__":
    key = jax.random.PRNGKey(0)
    k_out, k_conf, k_idx = jax.random.split(key, 3)

    B = 20         # batch size (deliberately NOT a multiple of 8)
    C = 32         # number of classes
    N = 64         # size of the dataset-level confidence table

    outputs = jax.random.normal(k_out, (B, C), dtype=jnp.float32)

    # deterministic "confidence" parameter: rows sum to 1 (soft labels)
    raw = jax.random.uniform(k_conf, (N, C), dtype=jnp.float32)
    confidence = raw / jnp.sum(raw, axis=1, keepdims=True)

    index = jax.random.randint(k_idx, (B,), 0, N, dtype=jnp.int32)

    ref = partial_loss_reference(outputs, confidence, index)

    # 1) auto (small N -> in-kernel one-hot gather), single masked tile
    loss = jax.block_until_ready(
        partial_loss_forward(outputs, confidence, index))
    assert jnp.allclose(loss, ref, rtol=1e-5, atol=1e-5), (loss, ref)

    # 2) multi-tile parallel grid with a partial last tile
    loss_mt = jax.block_until_ready(
        partial_loss_forward(outputs, confidence, index, tile_rows=8))
    assert jnp.allclose(loss_mt, ref, rtol=1e-5, atol=1e-5), (loss_mt, ref)

    # 3) wrapper-gather path (what "auto" selects for dataset-scale N)
    loss_w = jax.block_until_ready(
        partial_loss_forward(outputs, confidence, index,
                             gather_mode="wrapper"))
    assert jnp.allclose(loss_w, ref, rtol=1e-5, atol=1e-5), (loss_w, ref)

    # 4) bf16 confidence table: one-hot stays bf16 -> native bf16 MXU path,
    #    table never re-cast inside the kernel.
    conf_bf16 = confidence.astype(jnp.bfloat16)
    ref_bf16 = partial_loss_reference(outputs, conf_bf16, index)
    loss_bf16 = jax.block_until_ready(
        partial_loss_forward(outputs, conf_bf16, index, gather_mode="onehot"))
    assert jnp.allclose(loss_bf16, ref_bf16, rtol=1e-5, atol=1e-5), (
        loss_bf16, ref_bf16)

    print("KERNEL_OK")
</pallas_src>

<mosaic_0001>
module attributes {stable_mosaic.version = 11 : i64} {
  func.func @_partial_loss_kernel_onehot(%arg0: i32, %arg1: memref<24x32xf32, #tpu.memory_space<vmem>>, %arg2: memref<24x1xi32, #tpu.memory_space<vmem>>, %arg3: memref<64x32xf32, #tpu.memory_space<vmem>>, %arg4: memref<8x128xf32, #tpu.memory_space<vmem>>) attributes {dimension_semantics = [#tpu.dimension_semantics<parallel>], iteration_bounds = array<i64: 1>, scalar_prefetch = 0 : i64, scratch_operands = 0 : i64, tpu.core_type = #tpu.core_type<tc>, window_params = [{transform_indices = @transform_0, window_bounds = array<i64: 24, 32>}, {transform_indices = @transform_1, window_bounds = array<i64: 24, 1>}, {pipeline_mode = #tpu.pipeline_mode<synchronous>, transform_indices = @transform_2, window_bounds = array<i64: 64, 32>}, {transform_indices = @transform_3, window_bounds = array<i64: 8, 128>}]} {
    %c0 = arith.constant 0 : index
    %c0_0 = arith.constant 0 : index
    %0 = vector.load %arg1[%c0, %c0_0] : memref<24x32xf32, #tpu.memory_space<vmem>>, vector<24x32xf32>
    %cst = arith.constant dense<0xFF800000> : vector<24xf32>
    %1 = vector.multi_reduction <maximumf>, %0, %cst [1] : vector<24x32xf32> to vector<24xf32>
    %2 = vector.shape_cast %1 : vector<24xf32> to vector<24x1xf32>
    %3 = vector.broadcast %2 : vector<24x1xf32> to vector<24x32xf32>
    %4 = arith.subf %0, %3 : vector<24x32xf32>
    %5 = math.exp %4 : vector<24x32xf32>
    %cst_1 = arith.constant dense<0.000000e+00> : vector<24xf32>
    %6 = vector.multi_reduction <add>, %5, %cst_1 [1] : vector<24x32xf32> to vector<24xf32>
    %7 = vector.shape_cast %6 : vector<24xf32> to vector<24x1xf32>
    %8 = math.log %7 : vector<24x1xf32>
    %9 = vector.broadcast %8 : vector<24x1xf32> to vector<24x32xf32>
    %10 = arith.subf %4, %9 : vector<24x32xf32>
    %c0_2 = arith.constant 0 : index
    %c0_3 = arith.constant 0 : index
    %11 = vector.load %arg2[%c0_2, %c0_3] : memref<24x1xi32, #tpu.memory_space<vmem>>, vector<24x1xi32>
    %12 = tpu.iota {dimensions = array<i32: 1>} : vector<24x64xi32>
    %13 = vector.broadcast %11 : vector<24x1xi32> to vector<24x64xi32>
    %14 = arith.cmpi eq, %12, %13 : vector<24x64xi32>
    %15 = arith.extui %14 : vector<24x64xi1> to vector<24x64xi32>
    %16 = arith.sitofp %15 : vector<24x64xi32> to vector<24x64xf32>
    %c0_4 = arith.constant 0 : index
    %c0_5 = arith.constant 0 : index
    %17 = vector.load %arg3[%c0_4, %c0_5] : memref<64x32xf32, #tpu.memory_space<vmem>>, vector<64x32xf32>
    %cst_6 = arith.constant dense<0.000000e+00> : vector<24x32xf32>
    %18 = tpu.matmul %16, %17, %cst_6 {dimension_numbers = #tpu.dot_dimension_numbers<[1], [0], [0], [1], [0, 0, 1, 1], [], []>} : vector<24x64xf32>, vector<64x32xf32>, vector<24x32xf32> -> vector<24x32xf32>
    %19 = arith.mulf %10, %18 : vector<24x32xf32>
    %cst_7 = arith.constant dense<0.000000e+00> : vector<24xf32>
    %20 = vector.multi_reduction <add>, %19, %cst_7 [1] : vector<24x32xf32> to vector<24xf32>
    %21 = vector.shape_cast %20 : vector<24xf32> to vector<24x1xf32>
    %c24_i32 = arith.constant 24 : i32
    %22 = arith.muli %arg0, %c24_i32 : i32
    %23 = tpu.iota {dimensions = array<i32: 0>} : vector<24x1xi32>
    %24 = vector.broadcast %22 : i32 to vector<24x1xi32>
    %25 = arith.addi %24, %23 : vector<24x1xi32>
    %c20_i32 = arith.constant 20 : i32
    %26 = vector.broadcast %c20_i32 : i32 to vector<24x1xi32>
    %27 = arith.cmpi slt, %25, %26 : vector<24x1xi32>
    %cst_8 = arith.constant 0.000000e+00 : f32
    %28 = vector.broadcast %cst_8 : f32 to vector<24x1xf32>
    %29 = arith.select %27, %21, %28 : vector<24x1xi1>, vector<24x1xf32>
    %30 = vector.shape_cast %29 : vector<24x1xf32> to vector<1x24x1xf32>
    %cst_9 = arith.constant dense<0.000000e+00> : vector<1xf32>
    %31 = vector.multi_reduction <add>, %30, %cst_9 [1, 2] : vector<1x24x1xf32> to vector<1xf32>
    %32 = vector.shape_cast %31 : vector<1xf32> to vector<1x1x1xf32>
    %33 = vector.extract %32[0, 0, 0] : f32 from vector<1x1x1xf32>
    %34 = vector.broadcast %33 : f32 to vector<8x128xf32>
    %c0_10 = arith.constant 0 : index
    %c0_11 = arith.constant 0 : index
    %35 = vector.load %arg4[%c0_10, %c0_11] : memref<8x128xf32, #tpu.memory_space<vmem>>, vector<8x128xf32>
    tpu.vector_store %arg4[%c0_10, %c0_11], %34 {strides = array<i32>} : memref<8x128xf32, #tpu.memory_space<vmem>>, vector<8x128xf32>,
    return
  }
  func.func @transform_0(%arg0: i32) -> (i32, i32) {
    %c0_i32 = arith.constant 0 : i32
    %c0_i32_0 = arith.constant 0 : i32
    return %arg0, %c0_i32 : i32, i32
  }
  func.func @transform_1(%arg0: i32) -> (i32, i32) {
    %c0_i32 = arith.constant 0 : i32
    %c0_i32_0 = arith.constant 0 : i32
    return %arg0, %c0_i32 : i32, i32
  }
  func.func @transform_2(%arg0: i32) -> (i32, i32) {
    %c0_i32 = arith.constant 0 : i32
    %c0_i32_0 = arith.constant 0 : i32
    %c0_i32_1 = arith.constant 0 : i32
    return %c0_i32, %c0_i32_0 : i32, i32
  }
  func.func @transform_3(%arg0: i32) -> (i32, i32) {
    %c0_i32 = arith.constant 0 : i32
    %c0_i32_0 = arith.constant 0 : i32
    return %arg0, %c0_i32 : i32, i32
  }
}

</mosaic_0001>

<bundles_post_ra>
// kernel: tpu_custom_call.1
= control target key start
LH: loop header
LB: loop body
LE: loop exit
PB: predicated region body
PF: predicated region fallthrough
CT: control target
= control target key end

     0   :  { %vm18_vm0 = vcmask 261120   ;;  %v249_v2 = vmov 0   ;;  %s331_s0 = inlined_call_operand.vmem [shape: f32[20,32], index: 0, kind: input, shape index: {}]   ;;  %s332_s1 = inlined_call_operand.vmem [shape: s32[20,1], index: 1, kind: input, shape index: {}]   ;;  %s333_s2 = inlined_call_operand.vmem [shape: f32[64,32], index: 2, kind: input, shape index: {}]   ;;  %s334_s3 = inlined_call_operand.hbm [shape: f32[8,128], index: 3, kind: output, shape index: {}]  }
   0x1   :  { %v56_v0 = vld [vmem:[%s332_s1 + $0x8] sm:$0xff]  ;;  %210 = vset.pattern.permute.xlu1 %v249_v2  ;;  %209 = vset.pattern.permute.xlu0 %v249_v2  ;;  %v57_v4 = vld [vmem:[%s332_s1 + $0x10] sm:$0xff] }
   0x2   :  { %v16_v1 = vld [vmem:[%s331_s0 + $0x8] sm:$0xff] }
   0x3   :  { %v22_v3 = vsel %vm18_vm0, %v16_v1, -inf }
   0x4   :  { %8 = vsyncpa [#allocation3], 0  ;;  %64 = vperm.xlu1 %210, %v56_v0   ;;  %23 = vmax.xlane.f32.xlu2 %v22_v3  ;;  %v17_v5 = vld [vmem:[%s331_s0 + $0x10] sm:$0xff]  ;;  %v55_v7 = vld [vmem:[%s332_s1] sm:$0xff]  ;;  %v58_v18 = vlaneseq  ;;  %vm86_vm1 = vcmask 523264   ;;  %v250_v23 = vmov 0.0  }
   0x5   :  { %67 = vperm.xlu0 %209, %v57_v4   ;;  %v25_v6 = vsel %vm18_vm0, %v17_v5, -inf  ;;  %v85_v8 = vld [vmem:[%s333_s2 + $0x38] sm:$0xff]  ;;  %v84_v9 = vld [vmem:[%s333_s2 + $0x30] sm:$0xff]  ;;  %v83_v10 = vld [vmem:[%s333_s2 + $0x28] sm:$0xff]  ;;  %vm149_vm5 = vcmask 7168   ;;  %s173_s14 = sshll.u32 %s334_s3, 4  ;;  %s174_s14 = int_to_ptr.hbm [resolvable:$true] %s173_s14 }
   0x6   :  { %188 = vmatpush.msra.mxu1 %v85_v8  ;;  %189 = vmatpush.msra.mxu2 %v85_v8  ;;  %v82_v11 = vld [vmem:[%s333_s2 + $0x20] sm:$0xff]  ;;  %v81_v12 = vld [vmem:[%s333_s2 + $0x18] sm:$0xff]  ;;  %v80_v13 = vld [vmem:[%s333_s2 + $0x10] sm:$0xff]  ;;  %v59_v19 = vand.u32 127, %v58_v18  ;;  %v136_v0 = vshrl.u32 %v58_v18, 7 }
   0x7   :  { %104 = vmatpush.msra.mxu0 %v85_v8  ;;  %v79_v14 = vld [vmem:[%s333_s2 + $0x8] sm:$0xff]  ;;  %v15_v15 = vld [vmem:[%s331_s0] sm:$0xff]  ;;  %s251_s0 = smov [#allocation2]  }
   0x8   :  { %190 = vmatpush.msra.mxu1 %v84_v9  ;;  %191 = vmatpush.msra.mxu2 %v84_v9  ;;  %v19_v16 = vsel %vm18_vm0, %v15_v15, -inf  ;;  %v78_v17 = vld [vmem:[%s333_s2] sm:$0xff]  ;;  %v138_v2 = vadd.s32 16, %v136_v0  ;;  %s171_s2 = sshll.u32 %s251_s0, 4  ;;  %s172_s2 = int_to_ptr.vmem [resolvable:$true] %s171_s2 }
   0x9   :  { %105 = vmatpush.msra.mxu0 %v84_v9 }
   0xa   :  { %192 = vmatpush.msra.mxu1 %v83_v10  ;;  %193 = vmatpush.msra.mxu2 %v83_v10  ;;  %vm145_vm6 = vcmp.lt.s32.totalorder %v138_v2, 20 }
   0xb   :  { %106 = vmatpush.msra.mxu0 %v83_v10 }
   0xc   :  { %26 = vmax.xlane.f32.xlu2 %v25_v6  ;;  %194 = vmatpush.msra.mxu1 %v82_v11 }
   0xd   :  { %61 = vperm.xlu0 %209, %v55_v7   ;;  %195 = vmatpush.msra.mxu2 %v82_v11 }
   0xe   :  { %107 = vmatpush.msra.mxu0 %v82_v11  ;;  %196 = vmatpush.msra.mxu1 %v81_v12 }
   0xf   :  { %197 = vmatpush.msra.mxu2 %v81_v12 }
  0x10   :  { %108 = vmatpush.msra.mxu0 %v81_v12  ;;  %198 = vmatpush.msra.mxu1 %v80_v13 }
  0x11   :  { %199 = vmatpush.msra.mxu2 %v80_v13 }
  0x12   :  { %109 = vmatpush.msra.mxu0 %v80_v13  ;;  %200 = vmatpush.msra.mxu1 %v79_v14 }
  0x13   :  { %201 = vmatpush.msra.mxu2 %v79_v14 }
  0x14   :  { %110 = vmatpush.msra.mxu0 %v79_v14  ;;  %202 = vmatpush.msra.mxu1 %v78_v17 }
  0x15   :  { %203 = vmatpush.msra.mxu2 %v78_v17 }
  0x16   :  { %111 = vmatpush.msra.mxu0 %v78_v17 }
  0x2e   :  { %20 = vmax.xlane.f32.xlu1 %v19_v16 }
  0x76   :  { %v65_v20 = vpop.permute.xlu1 %64 }
  0x77   :  { %vm70_vm2 = vcmp.eq.s32.totalorder %v59_v19, %v65_v20  ;;  %v24_v21 = vpop.xlane.xlu2 %23  ;;  %v68_v22 = vpop.permute.xlu0 %67 }
  0x78   :  { %v183_v24 = vsel %vm70_vm2, 1.0, %v250_v23  ;;  %v29_v25 = vsub.f32 %v16_v1, %v24_v21  ;;  %vm71_vm3 = vcmp.eq.s32.totalorder %v59_v19, %v68_v22 }
  0x79   :  { %186 = vmatmul.msk.f32.vlgmr.msra.gmra.mxu1 %vm86_vm1, %v183_v24  ;;  %v184_v26 = vsel %vm71_vm3, 1.0, %v250_v23 }
  0x7a   :  { %v33_v27 = vmul.f32 1.442695, %v29_v25  ;;  %187 = vmatmul.msk.f32.vlgmr.msra.gmra.mxu2 %vm86_vm1, %v184_v26 }
  0x7c   :  { %211 = vpow2.f32 %v33_v27 }
  0x7f   :  { %v27_v28 = vpop.xlane.xlu2 %26  ;;  %v62_v33 = vpop.permute.xlu0 %61 }
  0x80   :  { %v30_v29 = vsub.f32 %v17_v5, %v27_v28  ;;  %vm69_vm4 = vcmp.eq.s32.totalorder %v59_v19, %v62_v33 }
  0x81   :  { %v182_v34 = vsel %vm69_vm4, 1.0, %v250_v23 }
  0x82   :  { %v212_v30 = vpop.eup %211  ;;  %v35_v31 = vmul.f32 1.442695, %v30_v29  ;;  %185 = vmatmul.msk.f32.vlgmr.msra.gmra.mxu0 %vm86_vm1, %v182_v34 }
  0x83   :  { %v40_v32 = vsel %vm18_vm0, %v212_v30, 0.0 }
  0x84   :  { %213 = vpow2.f32 %v35_v31  ;;  %41 = vadd.xlane.f32.xlu2 %v40_v32 }
  0x8a   :  { %v214_v35 = vpop.eup %213 }
  0x8b   :  { %v43_v36 = vsel %vm18_vm0, %v214_v35, 0.0 }
  0x8c   :  { %44 = vadd.xlane.f32.xlu2 %v43_v36 }
  0xa1   :  { %v21_v37 = vpop.xlane.xlu1 %20 }
  0xa2   :  { %v28_v38 = vsub.f32 %v15_v15, %v21_v37 }
  0xa4   :  { %v31_v39 = vmul.f32 1.442695, %v28_v38 }
  0xa6   :  { %215 = vpow2.f32 %v31_v39 }
  0xac   :  { %v216_v40 = vpop.eup %215 }
  0xad   :  { %v37_v41 = vsel %vm18_vm0, %v216_v40, 0.0 }
  0xae   :  { %38 = vadd.xlane.f32.xlu0 %v37_v41 }
  0xf6   :  { %v116_v55 = vpop.f32.mrf.mxu1 }
  0xf7   :  { %v42_v42 = vpop.xlane.xlu2 %41 }
  0xf8   :  { %217 = vlog2.f32 %v42_v42 }
  0xfd   :  { %v119_v60 = vpop.f32.mrf.mxu2 }
  0xfe   :  { %v218_v44 = vpop.eup %217 }
  0xff   :  { %v45_v45 = vpop.xlane.xlu2 %44  ;;  %v49_v48 = vmul.f32 0.6931472, %v218_v44  ;;  %v113_v50 = vpop.f32.mrf.mxu0 }
 0x101   :  { %v53_v52 = vsub.f32 %v29_v25, %v49_v48 }
 0x103   :  { %v123_v57 = vmul.f32 %v116_v55, %v53_v52 }
 0x105   :  { %v128_v59 = vsel %vm18_vm0, %v123_v57, 0.0 }
 0x121   :  { %v39_v43 = vpop.xlane.xlu0 %38 }
 0x122   :  { %219 = vlog2.f32 %v39_v43 }
 0x123   :  { %221 = vlog2.f32 %v45_v45 }
 0x128   :  { %v220_v46 = vpop.eup %219 }
 0x129   :  { %v47_v47 = vmul.f32 0.6931472, %v220_v46  ;;  %v222_v54 = vpop.eup %221 }
 0x12a   :  { %v51_v56 = vmul.f32 0.6931472, %v222_v54 }
 0x12b   :  { %v52_v49 = vsub.f32 %v28_v38, %v47_v47 }
 0x12c   :  { %v54_v58 = vsub.f32 %v30_v29, %v51_v56 }
 0x12d   :  { %v122_v51 = vmul.f32 %v113_v50, %v52_v49 }
 0x12e   :  { %v124_v61 = vmul.f32 %v119_v60, %v54_v58 }
 0x12f   :  { %v125_v53 = vsel %vm18_vm0, %v122_v51, 0.0 }
 0x130   :  { %126 = vadd.xlane.f32.xlu2 %v125_v53  ;;  %v131_v62 = vsel %vm18_vm0, %v124_v61, 0.0 }
 0x138   :  { %129 = vadd.xlane.f32.xlu2 %v128_v59 }
 0x140   :  { %132 = vadd.xlane.f32.xlu2 %v131_v62 }
 0x1a3   :  { %v127_v63 = vpop.xlane.xlu2 %126 }
 0x1a4   :  { %v150_v4 = vsel %vm149_vm5, %v127_v63, 0.0 }
 0x1ab   :  { %v130_v1 = vpop.xlane.xlu2 %129 }
 0x1ac   :  { %v151_v3 = vsel %vm149_vm5, %v130_v1, 0.0 }
 0x1ad   :  { %v152_v6 = vadd.f32 %v151_v3, %v150_v4 }
 0x1b3   :  { %v133_v5 = vpop.xlane.xlu2 %132 }
 0x1b4   :  { %v148_v7 = vsel %vm145_vm6, %v133_v5, 0.0 }
 0x1b5   :  { %v153_v8 = vsel %vm149_vm5, %v148_v7, 0.0 }
 0x1b6   :  { %v154_v9 = vadd.f32 %v153_v8, %v152_v6 }
 0x1b8   :  { %155 = vadd.xlane.f32.xlu1 %v154_v9 }
 0x22b   :  { %v156_v10 = vpop.xlane.xlu1 %155 }
 0x22c   :  { %v157_v11 = vrot.slane %v156_v10, 4 }
 0x22e   :  { %v158_v12 = vadd.f32 %v157_v11, %v156_v10 }
 0x230   :  { %v159_v13 = vrot.slane %v158_v12, 2 }
 0x232   :  { %v160_v14 = vadd.f32 %v159_v13, %v158_v12 }
 0x234   :  { %v161_v15 = vrot.slane %v160_v14, 1 }
 0x236   :  { %v162_v16 = vadd.f32 %v161_v15, %v160_v14 }
 0x238   :  { %204 = vpush %v162_v16 }
 0x269   :  { %s205_s15 = spop %204 }
 0x26a   :  { %v164_v17 = vstv %s205_s15 }
 0x26b   :  { %165 = vst [vmem:[#allocation2] sm:$0xff] %v164_v17 }
 0x26c   :  { %176 = dma.vmem_to_hbm [thread:$0]  %s172_s2, 128, %s174_s14, [#allocation3]  }
 0x26d   :  { %247 = dma.done.wait [#allocation3], 128  }
 0x26e   :  { %248 = vsyncadd [#allocation3], 4294967168 }
 0x26f   :  { %181 = vsyncpa [#allocation3], 1 }

</bundles_post_ra>
